<compile_context>
chip_gen: v5e
topology: v5e:2x2
jax: 0.10.0
libtpu: 0.0.40
codegen_flags: <defaults>
</compile_context>

<pallas_src>
import jax
import jax.numpy as jnp
from jax import lax
from jax.experimental import pallas as pl
from jax.experimental.pallas import tpu as pltpu  # noqa: F401  (TPU backend assumed)


# ----------------------------- configuration -------------------------------
BS = 2             # batch size
C = 64             # inp (feature channels)
H, W = 8, 16       # spatial -> inp_res = H*W = 128 (lane-dense)
HW = H * W
T = 8              # token_num
D = 128            # token_dim (module default; lane-dense token slab)
NH = 2             # num_heads (only used for the scale, as in the PyTorch code)
SCALE = (C // NH) ** (-0.5)
LN_EPS = 1e-5


# ------------------------------- kernel ------------------------------------
def l2g_attn_kernel(feat_ref, tok_ref,
                    q_wT_ref, q_b_ref,
                    proj_wT_ref, proj_b_ref,
                    gamma_ref, beta_ref,
                    out_ref):
    feat = feat_ref[...]                        # (BS, C, HW)   bf16
    tok = tok_ref[...]                          # (BS*T, D)     f32 (kept for residual)

    # ---- q projection on the folded token slab: (BS*T, D) @ (D, C) ---------
    q = jnp.dot(tok.astype(jnp.bfloat16), q_wT_ref[...],
                preferred_element_type=jnp.float32) + q_b_ref[...]     # (BS*T, C)
    # Fold the attention scale here (smaller tensor than the logits).
    t = (q * SCALE).reshape(BS, T, C).astype(jnp.bfloat16)              # (BS, T, C)

    # ---- attention logits: (BS, T, C) x (BS, C, HW) -> (BS, T, HW) ----------
    attn = jnp.einsum("btc,bch->bth", t, feat,
                      preferred_element_type=jnp.float32)

    # ---- softmax over HW (approx reciprocal -> EUP slot) --------------------
    m = jnp.max(attn, axis=-1, keepdims=True)
    e = jnp.exp(attn - m)
    p = e * pl.reciprocal(jnp.sum(e, axis=-1, keepdims=True), approx=True)

    # ---- attn @ k^T: (BS, T, HW) x (BS, C, HW) -> (BS, T, C) ---------------
    ao = jnp.einsum("bth,bch->btc", p.astype(jnp.bfloat16), feat,
                    preferred_element_type=jnp.float32)

    # ---- proj on the folded slab: (BS*T, C) @ (C, D) -----------------------
    tp = jnp.dot(ao.reshape(BS * T, C).astype(jnp.bfloat16), proj_wT_ref[...],
                 preferred_element_type=jnp.float32) + proj_b_ref[...]  # (BS*T, D)

    # ---- residual (drop_path rate 0 -> identity) + one-pass LayerNorm -------
    y = tok + tp
    mean = jnp.mean(y, axis=-1, keepdims=True)
    var = jnp.mean(y * y, axis=-1, keepdims=True) - mean * mean
    y_n = (y - mean) * lax.rsqrt(var + LN_EPS)
    out_ref[...] = y_n * gamma_ref[...] + beta_ref[...]                 # (BS*T, D)


# ------------------------------- wrapper ------------------------------------
@jax.jit
def local2global_attn(features, tokens, params):
    """features: (bs, C, H, W) f32 (NCHW); tokens: (T, bs, D) f32 -> (T, bs, D)."""
    bs = features.shape[0]
    feat = features.reshape(bs, C, HW).astype(jnp.bfloat16)         # (bs, C, HW)
    tok_flat = jnp.transpose(tokens, (1, 0, 2)).reshape(bs * T, D)  # (bs*T, D) f32

    q_wT = params["q_w"].T.astype(jnp.bfloat16)                  # (D, C)
    q_b = params["q_b"].reshape(1, C)
    proj_wT = params["proj_w"].T.astype(jnp.bfloat16)            # (C, D)
    proj_b = params["proj_b"].reshape(1, D)
    gamma = params["gamma"].reshape(1, D)
    beta = params["beta"].reshape(1, D)

    flops = (2 * bs * T * D * C        # q
             + 2 * bs * T * C * HW     # attn logits
             + 2 * bs * T * HW * C     # attn @ k^T
             + 2 * bs * T * C * D)     # proj
    transcendentals = bs * T * HW + 2 * bs * T          # exp + recip + rsqrt
    bytes_accessed = (feat.size * 2 + tok_flat.size * 4 + q_wT.size * 2
                      + proj_wT.size * 2
                      + (q_b.size + proj_b.size + gamma.size + beta.size) * 4
                      + bs * T * D * 4)

    out = pl.pallas_call(
        l2g_attn_kernel,
        out_shape=jax.ShapeDtypeStruct((bs * T, D), jnp.float32),
        cost_estimate=pl.CostEstimate(flops=flops,
                                      transcendentals=transcendentals,
                                      bytes_accessed=bytes_accessed),
    )(feat, tok_flat, q_wT, q_b, proj_wT, proj_b, gamma, beta)

    tokens_new = jnp.transpose(out.reshape(bs, T, D), (1, 0, 2))  # back to (T, bs, D)
    return tokens_new


# ---------------------------- pure-JAX reference -----------------------------
def reference(features, tokens, params):
    bs = features.shape[0]
    k = features.reshape(bs, C, HW)
    t = jnp.einsum("tbd,cd->tbc", tokens, params["q_w"]) + params["q_b"]  # (T,bs,C)
    t = jnp.transpose(t, (1, 0, 2))                                        # (bs,T,C)
    attn = jnp.einsum("btc,bch->bth", t, k) * SCALE                        # (bs,T,HW)
    p = jax.nn.softmax(attn, axis=-1)
    ao = jnp.einsum("bth,bch->btc", p, k)                                  # (bs,T,C)
    ao = jnp.transpose(ao, (1, 0, 2))                                      # (T,bs,C)
    tp = jnp.einsum("tbc,dc->tbd", ao, params["proj_w"]) + params["proj_b"]
    y = tokens + tp
    mean = y.mean(-1, keepdims=True)
    var = ((y - mean) ** 2).mean(-1, keepdims=True)
    return (y - mean) / jnp.sqrt(var + LN_EPS) * params["gamma"] + params["beta"]


# --------------------------------- main --------------------------------------
if __name__ == "__main__":
    key = jax.random.PRNGKey(0)
    keys = jax.random.split(key, 8)

    features = jax.random.normal(keys[0], (BS, C, H, W), jnp.float32)
    tokens = jax.random.normal(keys[1], (T, BS, D), jnp.float32)

    params = {
        "q_w": jax.random.normal(keys[2], (C, D), jnp.float32) * 0.05,     # Linear(D->C)
        "q_b": jax.random.normal(keys[3], (C,), jnp.float32) * 0.05,
        "proj_w": jax.random.normal(keys[4], (D, C), jnp.float32) * 0.05,  # Linear(C->D)
        "proj_b": jax.random.normal(keys[5], (D,), jnp.float32) * 0.05,
        "gamma": jnp.ones((D,), jnp.float32),
        "beta": jnp.zeros((D,), jnp.float32),
    }
    # TODO(synk): DropPath with rate>0 (stochastic depth) not implemented; rate=0.0 -> identity.

    tokens_new = local2global_attn(features, tokens, params)
    jax.block_until_ready(tokens_new)

    ref_tokens = reference(features, tokens, params)
    assert tokens_new.shape == (T, BS, D)
    assert jnp.allclose(tokens_new, ref_tokens, atol=2e-2, rtol=2e-2)

    print("KERNEL_OK")
</pallas_src>

<mosaic_0001>
module attributes {stable_mosaic.version = 11 : i64} {
  func.func @l2g_attn_kernel(%arg0: memref<2x64x128xbf16, #tpu.memory_space<vmem>>, %arg1: memref<16x128xf32, #tpu.memory_space<vmem>>, %arg2: memref<128x64xbf16, #tpu.memory_space<vmem>>, %arg3: memref<1x64xf32, #tpu.memory_space<vmem>>, %arg4: memref<64x128xbf16, #tpu.memory_space<vmem>>, %arg5: memref<1x128xf32, #tpu.memory_space<vmem>>, %arg6: memref<1x128xf32, #tpu.memory_space<vmem>>, %arg7: memref<1x128xf32, #tpu.memory_space<vmem>>, %arg8: memref<16x128xf32, #tpu.memory_space<vmem>>) attributes {dimension_semantics = [], scalar_prefetch = 0 : i64, scratch_operands = 0 : i64, tpu.core_type = #tpu.core_type<tc>} {
    %c0 = arith.constant 0 : index
    %c0_0 = arith.constant 0 : index
    %c0_1 = arith.constant 0 : index
    %0 = vector.load %arg0[%c0, %c0_0, %c0_1] : memref<2x64x128xbf16, #tpu.memory_space<vmem>>, vector<2x64x128xbf16>
    %c0_2 = arith.constant 0 : index
    %c0_3 = arith.constant 0 : index
    %1 = vector.load %arg1[%c0_2, %c0_3] : memref<16x128xf32, #tpu.memory_space<vmem>>, vector<16x128xf32>
    %2 = arith.truncf %1 : vector<16x128xf32> to vector<16x128xbf16>
    %c0_4 = arith.constant 0 : index
    %c0_5 = arith.constant 0 : index
    %3 = vector.load %arg2[%c0_4, %c0_5] : memref<128x64xbf16, #tpu.memory_space<vmem>>, vector<128x64xbf16>
    %cst = arith.constant dense<0.000000e+00> : vector<16x64xf32>
    %4 = tpu.matmul %2, %3, %cst {dimension_numbers = #tpu.dot_dimension_numbers<[1], [0], [0], [1], [0, 0, 1, 1], [], []>} : vector<16x128xbf16>, vector<128x64xbf16>, vector<16x64xf32> -> vector<16x64xf32>
    %c0_6 = arith.constant 0 : index
    %c0_7 = arith.constant 0 : index
    %5 = vector.load %arg3[%c0_6, %c0_7] : memref<1x64xf32, #tpu.memory_space<vmem>>, vector<1x64xf32>
    %6 = vector.broadcast %5 : vector<1x64xf32> to vector<16x64xf32>
    %7 = arith.addf %4, %6 : vector<16x64xf32>
    %cst_8 = arith.constant 0.176776692 : f32
    %8 = vector.broadcast %cst_8 : f32 to vector<16x64xf32>
    %9 = arith.mulf %7, %8 : vector<16x64xf32>
    %10 = vector.shape_cast %9 : vector<16x64xf32> to vector<2x8x64xf32>
    %11 = arith.truncf %10 : vector<2x8x64xf32> to vector<2x8x64xbf16>
    "tpu.trace_start"() <{level = 10 : i32, message = "btc,bch->bth"}> : () -> ()
    %cst_9 = arith.constant dense<0.000000e+00> : vector<2x8x128xf32>
    %12 = tpu.matmul %11, %0, %cst_9 {dimension_numbers = #tpu.dot_dimension_numbers<[2], [1], [1], [2], [0, 0, 0, 1, 1, 2], [0], [0]>} : vector<2x8x64xbf16>, vector<2x64x128xbf16>, vector<2x8x128xf32> -> vector<2x8x128xf32>
    "tpu.trace_stop"() : () -> ()
    %cst_10 = arith.constant dense<0xFF800000> : vector<2x8xf32>
    %13 = vector.multi_reduction <maximumf>, %12, %cst_10 [2] : vector<2x8x128xf32> to vector<2x8xf32>
    %14 = vector.shape_cast %13 : vector<2x8xf32> to vector<2x8x1xf32>
    %15 = vector.broadcast %14 : vector<2x8x1xf32> to vector<2x8x128xf32>
    %16 = arith.subf %12, %15 : vector<2x8x128xf32>
    %17 = math.exp %16 : vector<2x8x128xf32>
    %cst_11 = arith.constant dense<0.000000e+00> : vector<2x8xf32>
    %18 = vector.multi_reduction <add>, %17, %cst_11 [2] : vector<2x8x128xf32> to vector<2x8xf32>
    %19 = vector.shape_cast %18 : vector<2x8xf32> to vector<2x8x1xf32>
    %20 = tpu.reciprocal %19 {approx = true} : vector<2x8x1xf32> -> vector<2x8x1xf32>
    %21 = vector.broadcast %20 : vector<2x8x1xf32> to vector<2x8x128xf32>
    %22 = arith.mulf %17, %21 : vector<2x8x128xf32>
    %23 = arith.truncf %22 : vector<2x8x128xf32> to vector<2x8x128xbf16>
    "tpu.trace_start"() <{level = 10 : i32, message = "bth,bch->btc"}> : () -> ()
    %cst_12 = arith.constant dense<0.000000e+00> : vector<2x8x64xf32>
    %24 = tpu.matmul %23, %0, %cst_12 {dimension_numbers = #tpu.dot_dimension_numbers<[2], [2], [1], [1], [0, 0, 0, 1, 1, 1], [0], [0]>} : vector<2x8x128xbf16>, vector<2x64x128xbf16>, vector<2x8x64xf32> -> vector<2x8x64xf32>
    "tpu.trace_stop"() : () -> ()
    %25 = vector.shape_cast %24 : vector<2x8x64xf32> to vector<16x64xf32>
    %26 = arith.truncf %25 : vector<16x64xf32> to vector<16x64xbf16>
    %c0_13 = arith.constant 0 : index
    %c0_14 = arith.constant 0 : index
    %27 = vector.load %arg4[%c0_13, %c0_14] : memref<64x128xbf16, #tpu.memory_space<vmem>>, vector<64x128xbf16>
    %cst_15 = arith.constant dense<0.000000e+00> : vector<16x128xf32>
    %28 = tpu.matmul %26, %27, %cst_15 {dimension_numbers = #tpu.dot_dimension_numbers<[1], [0], [0], [1], [0, 0, 1, 1], [], []>} : vector<16x64xbf16>, vector<64x128xbf16>, vector<16x128xf32> -> vector<16x128xf32>
    %c0_16 = arith.constant 0 : index
    %c0_17 = arith.constant 0 : index
    %29 = vector.load %arg5[%c0_16, %c0_17] : memref<1x128xf32, #tpu.memory_space<vmem>>, vector<1x128xf32>
    %30 = vector.broadcast %29 : vector<1x128xf32> to vector<16x128xf32>
    %31 = arith.addf %28, %30 : vector<16x128xf32>
    %32 = arith.addf %1, %31 : vector<16x128xf32>
    %cst_18 = arith.constant dense<0.000000e+00> : vector<16xf32>
    %33 = vector.multi_reduction <add>, %32, %cst_18 [1] : vector<16x128xf32> to vector<16xf32>
    %34 = vector.shape_cast %33 : vector<16xf32> to vector<16x1xf32>
    %cst_19 = arith.constant 1.280000e+02 : f32
    %35 = vector.broadcast %cst_19 : f32 to vector<16x1xf32>
    %36 = arith.divf %34, %35 : vector<16x1xf32>
    %37 = arith.mulf %32, %32 : vector<16x128xf32>
    %cst_20 = arith.constant dense<0.000000e+00> : vector<16xf32>
    %38 = vector.multi_reduction <add>, %37, %cst_20 [1] : vector<16x128xf32> to vector<16xf32>
    %39 = vector.shape_cast %38 : vector<16xf32> to vector<16x1xf32>
    %cst_21 = arith.constant 1.280000e+02 : f32
    %40 = vector.broadcast %cst_21 : f32 to vector<16x1xf32>
    %41 = arith.divf %39, %40 : vector<16x1xf32>
    %42 = arith.mulf %36, %36 : vector<16x1xf32>
    %43 = arith.subf %41, %42 : vector<16x1xf32>
    %44 = vector.broadcast %36 : vector<16x1xf32> to vector<16x128xf32>
    %45 = arith.subf %32, %44 : vector<16x128xf32>
    %cst_22 = arith.constant 9.99999974E-6 : f32
    %46 = vector.broadcast %cst_22 : f32 to vector<16x1xf32>
    %47 = arith.addf %43, %46 : vector<16x1xf32>
    %48 = math.rsqrt %47 : vector<16x1xf32>
    %49 = vector.broadcast %48 : vector<16x1xf32> to vector<16x128xf32>
    %50 = arith.mulf %45, %49 : vector<16x128xf32>
    %c0_23 = arith.constant 0 : index
    %c0_24 = arith.constant 0 : index
    %51 = vector.load %arg6[%c0_23, %c0_24] : memref<1x128xf32, #tpu.memory_space<vmem>>, vector<1x128xf32>
    %52 = vector.broadcast %51 : vector<1x128xf32> to vector<16x128xf32>
    %53 = arith.mulf %50, %52 : vector<16x128xf32>
    %c0_25 = arith.constant 0 : index
    %c0_26 = arith.constant 0 : index
    %54 = vector.load %arg7[%c0_25, %c0_26] : memref<1x128xf32, #tpu.memory_space<vmem>>, vector<1x128xf32>
    %55 = vector.broadcast %54 : vector<1x128xf32> to vector<16x128xf32>
    %56 = arith.addf %53, %55 : vector<16x128xf32>
    %c0_27 = arith.constant 0 : index
    %c0_28 = arith.constant 0 : index
    %57 = vector.load %arg8[%c0_27, %c0_28] : memref<16x128xf32, #tpu.memory_space<vmem>>, vector<16x128xf32>
    tpu.vector_store %arg8[%c0_27, %c0_28], %56 {strides = array<i32>} : memref<16x128xf32, #tpu.memory_space<vmem>>, vector<16x128xf32>,
    return
  }
}

</mosaic_0001>

<bundles_post_ra>
// kernel: local2global_attn.1
= control target key start
LH: loop header
LB: loop body
LE: loop exit
PB: predicated region body
PF: predicated region fallthrough
CT: control target
= control target key end

     0   :  { %vm159_vm0 = vcmask 523264   ;;  %s650_s2 = inlined_call_operand.vmem [shape: bf16[128,64], index: 2, kind: input, shape index: {}]   ;;  %s651_s0 = inlined_call_operand.vmem [shape: bf16[2,64,128], index: 0, kind: input, shape index: {}]   ;;  %s652_s3 = inlined_call_operand.vmem [shape: f32[1,64], index: 3, kind: input, shape index: {}]   ;;  %s653_s1 = inlined_call_operand.vmem [shape: f32[16,128], index: 1, kind: input, shape index: {}]   ;;  %s654_s4 = inlined_call_operand.vmem [shape: bf16[64,128], index: 4, kind: input, shape index: {}]   ;;  %s655_s5 = inlined_call_operand.vmem [shape: f32[1,128], index: 5, kind: input, shape index: {}]   ;;  %s656_s6 = inlined_call_operand.vmem [shape: f32[1,128], index: 6, kind: input, shape index: {}]   ;;  %s657_s7 = inlined_call_operand.vmem [shape: f32[1,128], index: 7, kind: input, shape index: {}]   ;;  %s658_s8 = inlined_call_operand.vmem [shape: f32[16,128], index: 8, kind: output, shape index: {}]  }
   0x1   :  { %v485_v0 = vld [vmem:[%s650_s2 + $0x38] sm:$0xff]  ;;  %v484_v1 = vld [vmem:[%s650_s2 + $0x30] sm:$0xff]  ;;  %v483_v4 = vld [vmem:[%s650_s2 + $0x28] sm:$0xff] }
   0x2   :  { %117 = vmatpush.bf16.msra.mxu0 %v485_v0  ;;  %v473_v2 = vld [vmem:[%s651_s0 + $0x18] sm:$0xff]  ;;  %v472_v3 = vld [vmem:[%s651_s0 + $0x10] sm:$0xff]  ;;  %v482_v5 = vld [vmem:[%s650_s2 + $0x20] sm:$0xff] }
   0x3   :  { %167 = vmatpush.bf16.msra.mxu1 %v473_v2  ;;  %240 = vmatpush.bf16.xpose.msra.mxu3 %v473_v2  ;;  %v481_v6 = vld [vmem:[%s650_s2 + $0x18] sm:$0xff]  ;;  %v480_v7 = vld [vmem:[%s650_s2 + $0x10] sm:$0xff]  ;;  %v479_v8 = vld [vmem:[%s650_s2 + $0x8] sm:$0xff]  ;;  %v509_v2 = vmov 128.0  }
   0x4   :  { %v478_v9 = vld [vmem:[%s650_s2] sm:$0xff]  ;;  %v593_v11 = vld [vmem:[%s653_s1 + $0x8] sm:$0xff]  ;;  %v477_v14 = vld [vmem:[%s651_s0 + $0x38] sm:$0xff] }
   0x5   :  { %v588_v10 = vld [vmem:[%s653_s1] sm:$0xff]  ;;  %v471_v13 = vld [vmem:[%s651_s0 + $0x8] sm:$0xff]  ;;  %207 = vmatpush.bf16.msra.mxu2 %v477_v14  ;;  %v476_v16 = vld [vmem:[%s651_s0 + $0x30] sm:$0xff] }
   0x6   :  { %118 = vmatpush.bf16.msra.mxu0 %v484_v1  ;;  %v48_v12 = vpack.c.bf16 %v593_v11, %v588_v10  ;;  %v470_v15 = vld [vmem:[%s651_s0] sm:$0xff]  ;;  %v475_v17 = vld [vmem:[%s651_s0 + $0x28] sm:$0xff]  ;;  %v489_v40 = vld [vmem:[%s654_s4 + $0x18] sm:$0xff] }
   0x7   :  { %168 = vmatpush.bf16.msra.mxu1 %v472_v3  ;;  %v474_v18 = vld [vmem:[%s651_s0 + $0x20] sm:$0xff]  ;;  %v488_v41 = vld [vmem:[%s654_s4 + $0x10] sm:$0xff]  ;;  %v487_v50 = vld [vmem:[%s654_s4 + $0x8] sm:$0xff] }
   0x8   :  { %v491_v19 = vld [vmem:[%s652_s3] ss:$0 sm:$0xff] }
   0x9   :  { %208 = vmatpush.bf16.msra.mxu2 %v476_v16  ;;  %v486_v51 = vld [vmem:[%s654_s4] sm:$0xff] }
   0xa   :  { %119 = vmatpush.bf16.msra.mxu0 %v483_v4  ;;  %v492_v57 = vld [vmem:[%s655_s5] ss:$0 sm:$0xff] }
   0xb   :  { %241 = vmatpush.bf16.xpose.msra.mxu3 %v472_v3  ;;  %169 = vmatpush.bf16.msra.mxu1 %v471_v13 }
   0xd   :  { %209 = vmatpush.bf16.msra.mxu2 %v475_v17 }
   0xe   :  { %120 = vmatpush.bf16.msra.mxu0 %v482_v5 }
   0xf   :  { %170 = vmatpush.bf16.msra.mxu1 %v470_v15 }
  0x11   :  { %210 = vmatpush.bf16.msra.mxu2 %v474_v18 }
  0x12   :  { %121 = vmatpush.bf16.msra.mxu0 %v481_v6 }
  0x13   :  { %242 = vmatpush.bf16.xpose.msra.mxu3 %v471_v13  ;;  %253 = vmatpush.bf16.xpose.msrb.mxu1 %v477_v14 }
  0x15   :  { %306 = vmatpush.bf16.msrb.mxu2 %v489_v40 }
  0x16   :  { %122 = vmatpush.bf16.msra.mxu0 %v480_v7 }
  0x19   :  { %307 = vmatpush.bf16.msrb.mxu2 %v488_v41 }
  0x1a   :  { %123 = vmatpush.bf16.msra.mxu0 %v479_v8 }
  0x1b   :  { %243 = vmatpush.bf16.xpose.msra.mxu3 %v470_v15  ;;  %254 = vmatpush.bf16.xpose.msrb.mxu1 %v476_v16 }
  0x1d   :  { %308 = vmatpush.bf16.msrb.mxu2 %v487_v50 }
  0x1e   :  { %124 = vmatpush.bf16.msra.mxu0 %v478_v9 }
  0x21   :  { %125 = vmatmul.bf16.vlgmr.msra.gmra.mxu0 %v48_v12  ;;  %309 = vmatpush.bf16.msrb.mxu2 %v486_v51 }
  0x23   :  { %255 = vmatpush.bf16.xpose.msrb.mxu1 %v475_v17 }
  0x2b   :  { %256 = vmatpush.bf16.xpose.msrb.mxu1 %v474_v18 }
  0x9e   :  { %v126_v20 = vpop.f32.mrf.mxu0 }
  0x9f   :  { %v127_v21 = vadd.f32 %v491_v19, %v126_v20 }
  0xa1   :  { %v131_v22 = vmul.f32 0.17677669, %v127_v21 }
  0xa3   :  { %v133_v23 = vpack.c.bf16 %v131_v22, %v131_v22 }
  0xa5   :  { %435 = vmatmul.msk.bf16.vlgmr.msra.gmra.mxu1 %vm159_vm0, %v133_v23 }
  0xa6   :  { %v128_v24 = vpop.f32.mrf.mxu0 }
  0xa7   :  { %v129_v25 = vadd.f32 %v491_v19, %v128_v24 }
  0xa9   :  { %v132_v26 = vmul.f32 0.17677669, %v129_v25 }
  0xab   :  { %v134_v27 = vpack.c.bf16 %v132_v26, %v132_v26 }
  0xad   :  { %452 = vmatmul.msk.bf16.vlgmr.msra.gmra.mxu2 %vm159_vm0, %v134_v27 }
 0x122   :  { %v172_v28 = vpop.f32.mrf.mxu1 }
 0x123   :  { %216 = vmax.xlane.f32.xlu0 %v172_v28 }
 0x12a   :  { %v174_v29 = vpop.f32.mrf.mxu1 }
 0x130   :  { %v212_v30 = vpop.f32.mrf.mxu2 }
 0x131   :  { %218 = vmax.xlane.f32.xlu0 %v212_v30 }
 0x138   :  { %v214_v31 = vpop.f32.mrf.mxu2 }
 0x196   :  { %v217_v32 = vpop.xlane.xlu0 %216 }
 0x197   :  { %v220_v33 = vsub.f32 %v172_v28, %v217_v32  ;;  %v493_v32 = vld [vmem:[%s656_s6] ss:$0 sm:$0xff] }
 0x199   :  { %v222_v34 = vmul.f32 1.442695, %v220_v33 }
 0x19b   :  { %495 = vpow2.f32 %v222_v34 }
 0x1a1   :  { %v496_v35 = vpop.eup %495 }
 0x1a2   :  { %226 = vadd.xlane.f32.xlu1 %v496_v35 }
 0x1a4   :  { %v219_v36 = vpop.xlane.xlu0 %218 }
 0x1a5   :  { %v221_v37 = vsub.f32 %v212_v30, %v219_v36 }
 0x1a7   :  { %v224_v38 = vmul.f32 1.442695, %v221_v37 }
 0x1a9   :  { %497 = vpow2.f32 %v224_v38 }
 0x1af   :  { %v498_v39 = vpop.eup %497 }
 0x1b0   :  { %228 = vadd.xlane.f32.xlu1 %v498_v39 }
 0x215   :  { %v227_v42 = vpop.xlane.xlu1 %226 }
 0x216   :  { %499 = vrcp.f32 %v227_v42 }
 0x21c   :  { %v500_v43 = vpop.eup %499 }
 0x21d   :  { %v232_v44 = vmul.f32 %v500_v43, %v496_v35  ;;  %v494_v35 = vld [vmem:[%s657_s7] ss:$0 sm:$0xff] }
 0x21f   :  { %v234_v45 = vpack.c.bf16 %v232_v44, %v232_v44 }
 0x221   :  { %244 = vmatmul.bf16.vlgmr.msra.gmra.mxu3 %v234_v45 }
 0x223   :  { %v229_v46 = vpop.xlane.xlu1 %228 }
 0x224   :  { %501 = vrcp.f32 %v229_v46 }
 0x225   :  { %503 = vrcp.f32 %v509_v2 }
 0x22a   :  { %v502_v47 = vpop.eup %501 }
 0x22b   :  { %v233_v48 = vmul.f32 %v502_v47, %v498_v39  ;;  %v504_v3 = vpop.eup %503 }
 0x22c   :  { %v323_v4 = vmul.f32 128.0, %v504_v3  ;;  %vm327_vm1 = vweird.f32 %v504_v3 }
 0x22d   :  { %v235_v49 = vpack.c.bf16 %v233_v48, %v233_v48 }
 0x22e   :  { %v324_v5 = vsub.f32 1.0, %v323_v4 }
 0x22f   :  { %257 = vmatmul.bf16.vlgmr.msrb.gmra.mxu1 %v235_v49 }
 0x230   :  { %v325_v6 = vmul.f32 %v504_v3, %v324_v5 }
 0x232   :  { %v326_v7 = vadd.f32 %v504_v3, %v325_v6 }
 0x234   :  { %v328_v8 = vsel %vm327_vm1, %v504_v3, %v326_v7 }
 0x2a4   :  { %v245_v52 = vpop.f32.mrf.mxu3 }
 0x2ac   :  { %v247_v53 = vpop.f32.mrf.mxu3  ;;  %v258_v54 = vpop.f32.mrf.mxu1 }
 0x2ad   :  { %v262_v55 = vpack.c.bf16 %v258_v54, %v245_v52 }
 0x2af   :  { %469 = vmatmul.msk.bf16.vlgmr.msrb.gmra.mxu2 %vm159_vm0, %v262_v55 }
 0x2b4   :  { %v260_v56 = vpop.f32.mrf.mxu1 }
 0x332   :  { %v311_v58 = vpop.f32.mrf.mxu2 }
 0x333   :  { %v312_v59 = vadd.f32 %v492_v57, %v311_v58 }
 0x335   :  { %v316_v60 = vadd.f32 %v312_v59, %v588_v10 }
 0x337   :  { %318 = vadd.xlane.f32.xlu2 %v316_v60  ;;  %v331_v61 = vmul.f32 %v316_v60, %v316_v60 }
 0x339   :  { %333 = vadd.xlane.f32.xlu0 %v331_v61 }
 0x33a   :  { %v313_v62 = vpop.f32.mrf.mxu2 }
 0x33b   :  { %v314_v63 = vadd.f32 %v492_v57, %v313_v62 }
 0x33d   :  { %v317_v0 = vadd.f32 %v314_v63, %v593_v11 }
 0x33f   :  { %320 = vadd.xlane.f32.xlu2 %v317_v0  ;;  %v332_v1 = vmul.f32 %v317_v0, %v317_v0 }
 0x341   :  { %335 = vadd.xlane.f32.xlu1 %v332_v1 }
 0x3aa   :  { %v319_v9 = vpop.xlane.xlu2 %318 }
 0x3ab   :  { %v329_v10 = vmul.f32 %v328_v8, %v319_v9 }
 0x3ac   :  { %v334_v12 = vpop.xlane.xlu0 %333 }
 0x3ad   :  { %v339_v13 = vmul.f32 %v329_v10, %v329_v10  ;;  %v337_v14 = vmul.f32 %v334_v12, %v328_v8  ;;  %v343_v31 = vsub.f32 %v316_v60, %v329_v10 }
 0x3af   :  { %v341_v15 = vsub.f32 %v337_v14, %v339_v13 }
 0x3b1   :  { %v345_v16 = vadd.f32 1e-05, %v341_v15 }
 0x3b2   :  { %v321_v11 = vpop.xlane.xlu2 %320 }
 0x3b3   :  { %505 = vrsqrt.f32 %v345_v16  ;;  %v330_v17 = vmul.f32 %v328_v8, %v321_v11  ;;  %vm353_vm3 = vweird.f32 %v345_v16 }
 0x3b4   :  { %v336_v18 = vpop.xlane.xlu1 %335 }
 0x3b5   :  { %v340_v19 = vmul.f32 %v330_v17, %v330_v17  ;;  %v338_v20 = vmul.f32 %v336_v18, %v328_v8  ;;  %v344_v42 = vsub.f32 %v317_v0, %v330_v17 }
 0x3b7   :  { %v342_v21 = vsub.f32 %v338_v20, %v340_v19 }
 0x3b9   :  { %v506_v22 = vpop.eup %505  ;;  %v346_v23 = vadd.f32 1e-05, %v342_v21 }
 0x3ba   :  { %v348_v24 = vmul.f32 %v506_v22, %v345_v16  ;;  %vm354_vm2 = vweird.f32 %v506_v22 }
 0x3bb   :  { %507 = vrsqrt.f32 %v346_v23  ;;  %vm355_vm4 = vmor %vm353_vm3, %vm354_vm2  ;;  %vm363_vm6 = vweird.f32 %v346_v23 }
 0x3bc   :  { %v349_v25 = vmul.f32 %v506_v22, %v348_v24 }
 0x3be   :  { %v350_v26 = vmul.f32 0.5, %v349_v25 }
 0x3c0   :  { %v351_v27 = vsub.f32 1.5, %v350_v26 }
 0x3c1   :  { %v508_v28 = vpop.eup %507 }
 0x3c2   :  { %v352_v29 = vmul.f32 %v506_v22, %v351_v27  ;;  %v358_v30 = vmul.f32 %v508_v28, %v346_v23  ;;  %vm364_vm5 = vweird.f32 %v508_v28 }
 0x3c3   :  { %vm365_vm7 = vmor %vm363_vm6, %vm364_vm5 }
 0x3c4   :  { %v356_v33 = vsel %vm355_vm4, %v506_v22, %v352_v29  ;;  %v359_v34 = vmul.f32 %v508_v28, %v358_v30 }
 0x3c5   :  { %v367_v36 = vmul.f32 %v356_v33, %v343_v31 }
 0x3c6   :  { %v360_v37 = vmul.f32 0.5, %v359_v34 }
 0x3c7   :  { %v373_v38 = vmul.f32 %v493_v32, %v367_v36 }
 0x3c8   :  { %v361_v39 = vsub.f32 1.5, %v360_v37 }
 0x3c9   :  { %v379_v40 = vadd.f32 %v494_v35, %v373_v38 }
 0x3ca   :  { %v362_v41 = vmul.f32 %v508_v28, %v361_v39 }
 0x3cb   :  { %381 = vst [vmem:[%s658_s8] sm:$0xff] %v379_v40 }
 0x3cc   :  { %v366_v43 = vsel %vm365_vm7, %v508_v28, %v362_v41 }
 0x3cd   :  { %v368_v44 = vmul.f32 %v366_v43, %v344_v42 }
 0x3cf   :  { %v374_v45 = vmul.f32 %v493_v32, %v368_v44 }
 0x3d1   :  { %v380_v46 = vadd.f32 %v494_v35, %v374_v45 }
 0x3d3   :  { %382 = vst [vmem:[%s658_s8 + $0x8] sm:$0xff] %v380_v46 }

</bundles_post_ra>
